<compile_context>
chip_gen: v5e
topology: v5e:2x2
jax: 0.10.0
libtpu: 0.0.40
codegen_flags: <defaults>
</compile_context>

<pallas_src>
import jax
import jax.numpy as jnp
from jax import lax
from jax.experimental import pallas as pl
from jax.experimental.pallas import tpu as pltpu


# Offsets of each layer's parameters inside the packed (48,) SMEM vector.
# Weights are PyTorch-style (out_features, in_features), row-major; biases 1D.
_W1, _B1 = 0, 12        # Linear(4,3): W (3,4), b (3,)
_W2, _B2 = 15, 21       # Linear(3,2): W (2,3), b (2,)
_W3, _B3 = 23, 29       # Linear(2,3): W (3,2), b (3,)
_W4, _B4 = 32, 44       # Linear(3,4): W (4,3), b (4,)
_NPARAMS = 48

_LANES = 128
_SUB_ALIGN = 8                      # f32 sublane alignment for block dims
_CHUNK_SUB = 128                    # inner-loop strip: 128 sublane-rows (16K batch rows)
_DEF_TILE_ROWS = 128 * 1024         # rows per grid step (~5 MiB HBM traffic / step;
                                    #  ~10 MiB double-buffered VMEM -> safe on v5e/v6e/v7x)
_SPLIT_MIN_SUB = 256                # only split a 1-step grid in two if each half
                                    #  carries >= 32K rows (~1.3 MiB of HBM traffic)


def _round_up(n, m):
    return (n + m - 1) // m * m


def autoencoder_kernel(p_ref, x_ref, out_ref):
    """p_ref:   (48,) f32 in SMEM (packed weights + biases).
    x_ref:   (4, S, 128) f32 in VMEM -- batch folded over (sublane, lane).
    out_ref: (6, S, 128) f32 in VMEM -- rows 0-1 = encoder, rows 2-5 = decoder.
    """
    # Hoist all 48 scalar SMEM reads to kernel start (single landing, no
    # per-multiply re-reads; JAX does not CSE these).
    p = [p_ref[k] for k in range(_NPARAMS)]

    def dense(ins, n_in, n_out, w_off, b_off):
        # y[j] = sum_i W[j, i] * x[i] + b[j]; scalar weights broadcast from
        # SMEM so each layer is a handful of VPU broadcast multiply-adds.
        outs = []
        for j in range(n_out):
            acc = ins[0] * p[w_off + j * n_in]
            for i in range(1, n_in):
                acc = acc + ins[i] * p[w_off + j * n_in + i]
            outs.append(acc + p[b_off + j])
        return outs

    def sigmoid(v):
        # Single EUP tanh per element on every TPU generation (avoids a
        # possible exp + divide lowering on v5e).
        return 0.5 * jnp.tanh(0.5 * v) + 0.5

    def process(off, rows):
        xs = [x_ref[i, pl.ds(off, rows), :] for i in range(4)]      # 4 x (rows,128)
        h1 = [jnp.tanh(v) for v in dense(xs, 4, 3, _W1, _B1)]
        enc = dense(h1, 3, 2, _W2, _B2)
        h2 = [jnp.tanh(v) for v in dense(enc, 2, 3, _W3, _B3)]
        dec = [sigmoid(v) for v in dense(h2, 3, 4, _W4, _B4)]
        for j, row in enumerate(enc + dec):
            out_ref[j, pl.ds(off, rows), :] = row

    s_total = x_ref.shape[1]
    chunk = min(_CHUNK_SUB, s_total)
    n_full = s_total // chunk
    rem = s_total - n_full * chunk

    if n_full == 1:
        process(0, chunk)
    else:
        def strip_body(c, carry):
            process(pl.multiple_of(c * chunk, chunk), chunk)
            return carry
        lax.fori_loop(0, n_full, strip_body, None)
    if rem:                                   # static tail (rem is a multiple of 8)
        process(n_full * chunk, rem)


def pack_params(params):
    """Flatten ((W,b) x 4) with PyTorch (out, in) weights into one (48,) f32 vector."""
    flat = []
    for w, b in params:
        flat.append(jnp.asarray(w, jnp.float32).reshape(-1))
        flat.append(jnp.asarray(b, jnp.float32).reshape(-1))
    packed = jnp.concatenate(flat)
    assert packed.shape == (_NPARAMS,)
    return packed


def autoencoder_forward_fm(x_fm, packed_params, *, batch_tile=_DEF_TILE_ROWS):
    """Feature-major entry point (the perf path -- no transposes, no full-array pad).

    x_fm: (4, B) float32.  Returns a (6, B) float32 slab:
      rows 0-1 = encoder output, rows 2-5 = decoder output.
    """
    F, B = x_fm.shape
    assert F == 4
    x_fm = x_fm.astype(jnp.float32)

    b128 = pl.cdiv(B, _LANES)                 # number of 128-lane rows
    if b128 * _LANES != B:
        # Ragged tail: pad to the next 128-lane boundary so the (4,B) ->
        # (4,b128,128) view is a zero-copy reshape.  This is the only copy the
        # wrapper ever makes, and only when B % 128 != 0.
        x_fm = jnp.pad(x_fm, ((0, 0), (0, b128 * _LANES - B)))
    x3 = x_fm.reshape(4, b128, _LANES)

    # ---- choose sublane-rows per grid step ----------------------------------
    sub_tile = max(_SUB_ALIGN,
                   _round_up(batch_tile, _SUB_ALIGN * _LANES) // _LANES)
    # Prefer >= 2 grid steps when there is enough work so the "parallel" batch
    # axis can shard across v7x's two TensorCores (harmless on v5e/v6e: each
    # half still carries >= 1.3 MiB of HBM traffic vs 0.35 us step overhead).
    if sub_tile >= b128 and b128 >= 2 * _SPLIT_MIN_SUB:
        sub_tile = _round_up(pl.cdiv(b128, 2), _SUB_ALIGN)
    sub_tile = min(sub_tile, _round_up(b128, _SUB_ALIGN))
    grid = pl.cdiv(b128, sub_tile)            # partial last block handled by Pallas

    elems = b128 * _LANES
    cost = pl.CostEstimate(
        flops=80 * elems,                     # ~72 MACs/adds + sigmoid fixups per row
        transcendentals=10 * elems,           # 6 tanh + 4 sigmoid(tanh) per row
        bytes_accessed=(4 + 6) * 4 * elems + _NPARAMS * 4,
    )

    out3 = pl.pallas_call(
        autoencoder_kernel,
        out_shape=jax.ShapeDtypeStruct((6, b128, _LANES), jnp.float32),
        grid_spec=pltpu.PrefetchScalarGridSpec(
            num_scalar_prefetch=0,
            grid=(grid,),
            in_specs=[
                # 48 packed weight/bias scalars live in SMEM (one tiny stream).
                pl.BlockSpec(memory_space=pltpu.MemorySpace.SMEM),
                pl.BlockSpec((4, sub_tile, _LANES), lambda i: (0, i, 0)),
            ],
            out_specs=pl.BlockSpec((6, sub_tile, _LANES), lambda i: (0, i, 0)),
        ),
        compiler_params=pltpu.CompilerParams(
            # Batch axis is embarrassingly parallel -> shards across v7x's 2 TCs.
            dimension_semantics=("parallel",),
        ),
        cost_estimate=cost,
    )(packed_params, x3)

    return out3.reshape(6, b128 * _LANES)[:, :B]


def autoencoder_forward(x, params, *, batch_tile=_DEF_TILE_ROWS):
    """Drop-in equivalent of autoencoder.forward: x (B,4) -> (enc (B,2), dec (B,4)).

    The (B,4)<->(4,B) transposes here are pure layout plumbing; perf-critical
    callers should use autoencoder_forward_fm end-to-end to avoid the extra
    HBM passes they cost.
    """
    # TODO(synk): fuse the (B,4)<->(4,B) de-interleave into the kernel with XLU
    # lane shuffles (and optionally bf16 I/O) to keep the batch-major API at a
    # single HBM pass.
    B, F = x.shape
    assert F == 4
    packed = pack_params(params)
    slab = autoencoder_forward_fm(jnp.asarray(x, jnp.float32).T, packed,
                                  batch_tile=batch_tile)
    enc = slab[0:2, :].T
    dec = slab[2:6, :].T
    return enc, dec


def init_params(key):
    """Mimics nn.Linear default uniform(-1/sqrt(fan_in), +1/sqrt(fan_in)) init.
    Weights stored PyTorch-style as (out_features, in_features)."""
    def linear(key, fan_in, fan_out):
        kw, kb = jax.random.split(key)
        bound = 1.0 / jnp.sqrt(fan_in)
        w = jax.random.uniform(kw, (fan_out, fan_in), jnp.float32, -bound, bound)
        b = jax.random.uniform(kb, (fan_out,), jnp.float32, -bound, bound)
        return w, b

    k1, k2, k3, k4 = jax.random.split(key, 4)
    return (
        linear(k1, 4, 3),  # encoder Linear(4,3)
        linear(k2, 3, 2),  # encoder Linear(3,2)
        linear(k3, 2, 3),  # decoder Linear(2,3)
        linear(k4, 3, 4),  # decoder Linear(3,4)
    )


def reference_forward(x, params):
    (w1, b1), (w2, b2), (w3, b3), (w4, b4) = params
    h1 = jnp.tanh(x @ w1.T + b1)
    enc = h1 @ w2.T + b2
    h2 = jnp.tanh(enc @ w3.T + b3)
    dec = jax.nn.sigmoid(h2 @ w4.T + b4)
    return enc, dec


if __name__ == "__main__":
    key = jax.random.PRNGKey(0)
    k_params, k1, k2, k3, k4 = jax.random.split(key, 5)
    params = init_params(k_params)

    def check(B, kx, batch_tile=_DEF_TILE_ROWS):
        x = jax.random.normal(kx, (B, 4), jnp.float32)
        enc, dec = autoencoder_forward(x, params, batch_tile=batch_tile)
        jax.block_until_ready((enc, dec))
        enc_ref, dec_ref = reference_forward(x, params)
        assert enc.shape == (B, 2) and dec.shape == (B, 4)
        assert jnp.allclose(enc, enc_ref, atol=1e-5, rtol=1e-5)
        assert jnp.allclose(dec, dec_ref, atol=1e-5, rtol=1e-5)

    # Small, deterministic cases exercising every wrapper/grid path:
    check(1024, k1, batch_tile=1024)   # exact single block, no padding
    check(4096, k2, batch_tile=1024)   # multi-step grid, no partial blocks
    check(200, k3)                     # ragged tail -> 128-lane pad + partial block
    check(2176, k4, batch_tile=1024)   # multi-step grid with partial last block
    print("KERNEL_OK")
</pallas_src>

<mosaic_0001>
module attributes {stable_mosaic.version = 11 : i64} {
  func.func @autoencoder_kernel(%arg0: i32, %arg1: memref<48xf32, #tpu.memory_space<smem>>, %arg2: memref<4x8x128xf32, #tpu.memory_space<vmem>>, %arg3: memref<6x8x128xf32, #tpu.memory_space<vmem>>) attributes {dimension_semantics = [#tpu.dimension_semantics<parallel>], iteration_bounds = array<i64: 1>, scalar_prefetch = 0 : i64, scratch_operands = 0 : i64, tpu.core_type = #tpu.core_type<tc>, window_params = [{transform_indices = @transform_0, window_bounds = array<i64: 48>}, {transform_indices = @transform_1, window_bounds = array<i64: 4, 8, 128>}, {transform_indices = @transform_2, window_bounds = array<i64: 6, 8, 128>}]} {
    %c0 = arith.constant 0 : index
    %0 = memref.load %arg1[%c0] : memref<48xf32, #tpu.memory_space<smem>>
    %c1 = arith.constant 1 : index
    %1 = memref.load %arg1[%c1] : memref<48xf32, #tpu.memory_space<smem>>
    %c2 = arith.constant 2 : index
    %2 = memref.load %arg1[%c2] : memref<48xf32, #tpu.memory_space<smem>>
    %c3 = arith.constant 3 : index
    %3 = memref.load %arg1[%c3] : memref<48xf32, #tpu.memory_space<smem>>
    %c4 = arith.constant 4 : index
    %4 = memref.load %arg1[%c4] : memref<48xf32, #tpu.memory_space<smem>>
    %c5 = arith.constant 5 : index
    %5 = memref.load %arg1[%c5] : memref<48xf32, #tpu.memory_space<smem>>
    %c6 = arith.constant 6 : index
    %6 = memref.load %arg1[%c6] : memref<48xf32, #tpu.memory_space<smem>>
    %c7 = arith.constant 7 : index
    %7 = memref.load %arg1[%c7] : memref<48xf32, #tpu.memory_space<smem>>
    %c8 = arith.constant 8 : index
    %8 = memref.load %arg1[%c8] : memref<48xf32, #tpu.memory_space<smem>>
    %c9 = arith.constant 9 : index
    %9 = memref.load %arg1[%c9] : memref<48xf32, #tpu.memory_space<smem>>
    %c10 = arith.constant 10 : index
    %10 = memref.load %arg1[%c10] : memref<48xf32, #tpu.memory_space<smem>>
    %c11 = arith.constant 11 : index
    %11 = memref.load %arg1[%c11] : memref<48xf32, #tpu.memory_space<smem>>
    %c12 = arith.constant 12 : index
    %12 = memref.load %arg1[%c12] : memref<48xf32, #tpu.memory_space<smem>>
    %c13 = arith.constant 13 : index
    %13 = memref.load %arg1[%c13] : memref<48xf32, #tpu.memory_space<smem>>
    %c14 = arith.constant 14 : index
    %14 = memref.load %arg1[%c14] : memref<48xf32, #tpu.memory_space<smem>>
    %c15 = arith.constant 15 : index
    %15 = memref.load %arg1[%c15] : memref<48xf32, #tpu.memory_space<smem>>
    %c16 = arith.constant 16 : index
    %16 = memref.load %arg1[%c16] : memref<48xf32, #tpu.memory_space<smem>>
    %c17 = arith.constant 17 : index
    %17 = memref.load %arg1[%c17] : memref<48xf32, #tpu.memory_space<smem>>
    %c18 = arith.constant 18 : index
    %18 = memref.load %arg1[%c18] : memref<48xf32, #tpu.memory_space<smem>>
    %c19 = arith.constant 19 : index
    %19 = memref.load %arg1[%c19] : memref<48xf32, #tpu.memory_space<smem>>
    %c20 = arith.constant 20 : index
    %20 = memref.load %arg1[%c20] : memref<48xf32, #tpu.memory_space<smem>>
    %c21 = arith.constant 21 : index
    %21 = memref.load %arg1[%c21] : memref<48xf32, #tpu.memory_space<smem>>
    %c22 = arith.constant 22 : index
    %22 = memref.load %arg1[%c22] : memref<48xf32, #tpu.memory_space<smem>>
    %c23 = arith.constant 23 : index
    %23 = memref.load %arg1[%c23] : memref<48xf32, #tpu.memory_space<smem>>
    %c24 = arith.constant 24 : index
    %24 = memref.load %arg1[%c24] : memref<48xf32, #tpu.memory_space<smem>>
    %c25 = arith.constant 25 : index
    %25 = memref.load %arg1[%c25] : memref<48xf32, #tpu.memory_space<smem>>
    %c26 = arith.constant 26 : index
    %26 = memref.load %arg1[%c26] : memref<48xf32, #tpu.memory_space<smem>>
    %c27 = arith.constant 27 : index
    %27 = memref.load %arg1[%c27] : memref<48xf32, #tpu.memory_space<smem>>
    %c28 = arith.constant 28 : index
    %28 = memref.load %arg1[%c28] : memref<48xf32, #tpu.memory_space<smem>>
    %c29 = arith.constant 29 : index
    %29 = memref.load %arg1[%c29] : memref<48xf32, #tpu.memory_space<smem>>
    %c30 = arith.constant 30 : index
    %30 = memref.load %arg1[%c30] : memref<48xf32, #tpu.memory_space<smem>>
    %c31 = arith.constant 31 : index
    %31 = memref.load %arg1[%c31] : memref<48xf32, #tpu.memory_space<smem>>
    %c32 = arith.constant 32 : index
    %32 = memref.load %arg1[%c32] : memref<48xf32, #tpu.memory_space<smem>>
    %c33 = arith.constant 33 : index
    %33 = memref.load %arg1[%c33] : memref<48xf32, #tpu.memory_space<smem>>
    %c34 = arith.constant 34 : index
    %34 = memref.load %arg1[%c34] : memref<48xf32, #tpu.memory_space<smem>>
    %c35 = arith.constant 35 : index
    %35 = memref.load %arg1[%c35] : memref<48xf32, #tpu.memory_space<smem>>
    %c36 = arith.constant 36 : index
    %36 = memref.load %arg1[%c36] : memref<48xf32, #tpu.memory_space<smem>>
    %c37 = arith.constant 37 : index
    %37 = memref.load %arg1[%c37] : memref<48xf32, #tpu.memory_space<smem>>
    %c38 = arith.constant 38 : index
    %38 = memref.load %arg1[%c38] : memref<48xf32, #tpu.memory_space<smem>>
    %c39 = arith.constant 39 : index
    %39 = memref.load %arg1[%c39] : memref<48xf32, #tpu.memory_space<smem>>
    %c40 = arith.constant 40 : index
    %40 = memref.load %arg1[%c40] : memref<48xf32, #tpu.memory_space<smem>>
    %c41 = arith.constant 41 : index
    %41 = memref.load %arg1[%c41] : memref<48xf32, #tpu.memory_space<smem>>
    %c42 = arith.constant 42 : index
    %42 = memref.load %arg1[%c42] : memref<48xf32, #tpu.memory_space<smem>>
    %c43 = arith.constant 43 : index
    %43 = memref.load %arg1[%c43] : memref<48xf32, #tpu.memory_space<smem>>
    %c44 = arith.constant 44 : index
    %44 = memref.load %arg1[%c44] : memref<48xf32, #tpu.memory_space<smem>>
    %c45 = arith.constant 45 : index
    %45 = memref.load %arg1[%c45] : memref<48xf32, #tpu.memory_space<smem>>
    %c46 = arith.constant 46 : index
    %46 = memref.load %arg1[%c46] : memref<48xf32, #tpu.memory_space<smem>>
    %c47 = arith.constant 47 : index
    %47 = memref.load %arg1[%c47] : memref<48xf32, #tpu.memory_space<smem>>
    %c0_0 = arith.constant 0 : index
    %c0_1 = arith.constant 0 : index
    %c0_2 = arith.constant 0 : index
    %48 = vector.load %arg2[%c0_0, %c0_1, %c0_2] : memref<4x8x128xf32, #tpu.memory_space<vmem>>, vector<1x8x128xf32>
    %49 = vector.shape_cast %48 : vector<1x8x128xf32> to vector<8x128xf32>
    %c1_3 = arith.constant 1 : index
    %c0_4 = arith.constant 0 : index
    %c0_5 = arith.constant 0 : index
    %50 = vector.load %arg2[%c1_3, %c0_4, %c0_5] : memref<4x8x128xf32, #tpu.memory_space<vmem>>, vector<1x8x128xf32>
    %51 = vector.shape_cast %50 : vector<1x8x128xf32> to vector<8x128xf32>
    %c2_6 = arith.constant 2 : index
    %c0_7 = arith.constant 0 : index
    %c0_8 = arith.constant 0 : index
    %52 = vector.load %arg2[%c2_6, %c0_7, %c0_8] : memref<4x8x128xf32, #tpu.memory_space<vmem>>, vector<1x8x128xf32>
    %53 = vector.shape_cast %52 : vector<1x8x128xf32> to vector<8x128xf32>
    %c3_9 = arith.constant 3 : index
    %c0_10 = arith.constant 0 : index
    %c0_11 = arith.constant 0 : index
    %54 = vector.load %arg2[%c3_9, %c0_10, %c0_11] : memref<4x8x128xf32, #tpu.memory_space<vmem>>, vector<1x8x128xf32>
    %55 = vector.shape_cast %54 : vector<1x8x128xf32> to vector<8x128xf32>
    %56 = vector.broadcast %0 : f32 to vector<8x128xf32>
    %57 = arith.mulf %49, %56 : vector<8x128xf32>
    %58 = vector.broadcast %1 : f32 to vector<8x128xf32>
    %59 = arith.mulf %51, %58 : vector<8x128xf32>
    %60 = arith.addf %57, %59 : vector<8x128xf32>
    %61 = vector.broadcast %2 : f32 to vector<8x128xf32>
    %62 = arith.mulf %53, %61 : vector<8x128xf32>
    %63 = arith.addf %60, %62 : vector<8x128xf32>
    %64 = vector.broadcast %3 : f32 to vector<8x128xf32>
    %65 = arith.mulf %55, %64 : vector<8x128xf32>
    %66 = arith.addf %63, %65 : vector<8x128xf32>
    %67 = vector.broadcast %12 : f32 to vector<8x128xf32>
    %68 = arith.addf %66, %67 : vector<8x128xf32>
    %69 = vector.broadcast %4 : f32 to vector<8x128xf32>
    %70 = arith.mulf %49, %69 : vector<8x128xf32>
    %71 = vector.broadcast %5 : f32 to vector<8x128xf32>
    %72 = arith.mulf %51, %71 : vector<8x128xf32>
    %73 = arith.addf %70, %72 : vector<8x128xf32>
    %74 = vector.broadcast %6 : f32 to vector<8x128xf32>
    %75 = arith.mulf %53, %74 : vector<8x128xf32>
    %76 = arith.addf %73, %75 : vector<8x128xf32>
    %77 = vector.broadcast %7 : f32 to vector<8x128xf32>
    %78 = arith.mulf %55, %77 : vector<8x128xf32>
    %79 = arith.addf %76, %78 : vector<8x128xf32>
    %80 = vector.broadcast %13 : f32 to vector<8x128xf32>
    %81 = arith.addf %79, %80 : vector<8x128xf32>
    %82 = vector.broadcast %8 : f32 to vector<8x128xf32>
    %83 = arith.mulf %49, %82 : vector<8x128xf32>
    %84 = vector.broadcast %9 : f32 to vector<8x128xf32>
    %85 = arith.mulf %51, %84 : vector<8x128xf32>
    %86 = arith.addf %83, %85 : vector<8x128xf32>
    %87 = vector.broadcast %10 : f32 to vector<8x128xf32>
    %88 = arith.mulf %53, %87 : vector<8x128xf32>
    %89 = arith.addf %86, %88 : vector<8x128xf32>
    %90 = vector.broadcast %11 : f32 to vector<8x128xf32>
    %91 = arith.mulf %55, %90 : vector<8x128xf32>
    %92 = arith.addf %89, %91 : vector<8x128xf32>
    %93 = vector.broadcast %14 : f32 to vector<8x128xf32>
    %94 = arith.addf %92, %93 : vector<8x128xf32>
    %95 = math.tanh %68 : vector<8x128xf32>
    %96 = math.tanh %81 : vector<8x128xf32>
    %97 = math.tanh %94 : vector<8x128xf32>
    %98 = vector.broadcast %15 : f32 to vector<8x128xf32>
    %99 = arith.mulf %95, %98 : vector<8x128xf32>
    %100 = vector.broadcast %16 : f32 to vector<8x128xf32>
    %101 = arith.mulf %96, %100 : vector<8x128xf32>
    %102 = arith.addf %99, %101 : vector<8x128xf32>
    %103 = vector.broadcast %17 : f32 to vector<8x128xf32>
    %104 = arith.mulf %97, %103 : vector<8x128xf32>
    %105 = arith.addf %102, %104 : vector<8x128xf32>
    %106 = vector.broadcast %21 : f32 to vector<8x128xf32>
    %107 = arith.addf %105, %106 : vector<8x128xf32>
    %108 = vector.broadcast %18 : f32 to vector<8x128xf32>
    %109 = arith.mulf %95, %108 : vector<8x128xf32>
    %110 = vector.broadcast %19 : f32 to vector<8x128xf32>
    %111 = arith.mulf %96, %110 : vector<8x128xf32>
    %112 = arith.addf %109, %111 : vector<8x128xf32>
    %113 = vector.broadcast %20 : f32 to vector<8x128xf32>
    %114 = arith.mulf %97, %113 : vector<8x128xf32>
    %115 = arith.addf %112, %114 : vector<8x128xf32>
    %116 = vector.broadcast %22 : f32 to vector<8x128xf32>
    %117 = arith.addf %115, %116 : vector<8x128xf32>
    %118 = vector.broadcast %23 : f32 to vector<8x128xf32>
    %119 = arith.mulf %107, %118 : vector<8x128xf32>
    %120 = vector.broadcast %24 : f32 to vector<8x128xf32>
    %121 = arith.mulf %117, %120 : vector<8x128xf32>
    %122 = arith.addf %119, %121 : vector<8x128xf32>
    %123 = vector.broadcast %29 : f32 to vector<8x128xf32>
    %124 = arith.addf %122, %123 : vector<8x128xf32>
    %125 = vector.broadcast %25 : f32 to vector<8x128xf32>
    %126 = arith.mulf %107, %125 : vector<8x128xf32>
    %127 = vector.broadcast %26 : f32 to vector<8x128xf32>
    %128 = arith.mulf %117, %127 : vector<8x128xf32>
    %129 = arith.addf %126, %128 : vector<8x128xf32>
    %130 = vector.broadcast %30 : f32 to vector<8x128xf32>
    %131 = arith.addf %129, %130 : vector<8x128xf32>
    %132 = vector.broadcast %27 : f32 to vector<8x128xf32>
    %133 = arith.mulf %107, %132 : vector<8x128xf32>
    %134 = vector.broadcast %28 : f32 to vector<8x128xf32>
    %135 = arith.mulf %117, %134 : vector<8x128xf32>
    %136 = arith.addf %133, %135 : vector<8x128xf32>
    %137 = vector.broadcast %31 : f32 to vector<8x128xf32>
    %138 = arith.addf %136, %137 : vector<8x128xf32>
    %139 = math.tanh %124 : vector<8x128xf32>
    %140 = math.tanh %131 : vector<8x128xf32>
    %141 = math.tanh %138 : vector<8x128xf32>
    %142 = vector.broadcast %32 : f32 to vector<8x128xf32>
    %143 = arith.mulf %139, %142 : vector<8x128xf32>
    %144 = vector.broadcast %33 : f32 to vector<8x128xf32>
    %145 = arith.mulf %140, %144 : vector<8x128xf32>
    %146 = arith.addf %143, %145 : vector<8x128xf32>
    %147 = vector.broadcast %34 : f32 to vector<8x128xf32>
    %148 = arith.mulf %141, %147 : vector<8x128xf32>
    %149 = arith.addf %146, %148 : vector<8x128xf32>
    %150 = vector.broadcast %44 : f32 to vector<8x128xf32>
    %151 = arith.addf %149, %150 : vector<8x128xf32>
    %152 = vector.broadcast %35 : f32 to vector<8x128xf32>
    %153 = arith.mulf %139, %152 : vector<8x128xf32>
    %154 = vector.broadcast %36 : f32 to vector<8x128xf32>
    %155 = arith.mulf %140, %154 : vector<8x128xf32>
    %156 = arith.addf %153, %155 : vector<8x128xf32>
    %157 = vector.broadcast %37 : f32 to vector<8x128xf32>
    %158 = arith.mulf %141, %157 : vector<8x128xf32>
    %159 = arith.addf %156, %158 : vector<8x128xf32>
    %160 = vector.broadcast %45 : f32 to vector<8x128xf32>
    %161 = arith.addf %159, %160 : vector<8x128xf32>
    %162 = vector.broadcast %38 : f32 to vector<8x128xf32>
    %163 = arith.mulf %139, %162 : vector<8x128xf32>
    %164 = vector.broadcast %39 : f32 to vector<8x128xf32>
    %165 = arith.mulf %140, %164 : vector<8x128xf32>
    %166 = arith.addf %163, %165 : vector<8x128xf32>
    %167 = vector.broadcast %40 : f32 to vector<8x128xf32>
    %168 = arith.mulf %141, %167 : vector<8x128xf32>
    %169 = arith.addf %166, %168 : vector<8x128xf32>
    %170 = vector.broadcast %46 : f32 to vector<8x128xf32>
    %171 = arith.addf %169, %170 : vector<8x128xf32>
    %172 = vector.broadcast %41 : f32 to vector<8x128xf32>
    %173 = arith.mulf %139, %172 : vector<8x128xf32>
    %174 = vector.broadcast %42 : f32 to vector<8x128xf32>
    %175 = arith.mulf %140, %174 : vector<8x128xf32>
    %176 = arith.addf %173, %175 : vector<8x128xf32>
    %177 = vector.broadcast %43 : f32 to vector<8x128xf32>
    %178 = arith.mulf %141, %177 : vector<8x128xf32>
    %179 = arith.addf %176, %178 : vector<8x128xf32>
    %180 = vector.broadcast %47 : f32 to vector<8x128xf32>
    %181 = arith.addf %179, %180 : vector<8x128xf32>
    %cst = arith.constant 5.000000e-01 : f32
    %182 = vector.broadcast %cst : f32 to vector<8x128xf32>
    %183 = arith.mulf %182, %151 : vector<8x128xf32>
    %184 = math.tanh %183 : vector<8x128xf32>
    %cst_12 = arith.constant 5.000000e-01 : f32
    %185 = vector.broadcast %cst_12 : f32 to vector<8x128xf32>
    %186 = arith.mulf %185, %184 : vector<8x128xf32>
    %cst_13 = arith.constant 5.000000e-01 : f32
    %187 = vector.broadcast %cst_13 : f32 to vector<8x128xf32>
    %188 = arith.addf %186, %187 : vector<8x128xf32>
    %cst_14 = arith.constant 5.000000e-01 : f32
    %189 = vector.broadcast %cst_14 : f32 to vector<8x128xf32>
    %190 = arith.mulf %189, %161 : vector<8x128xf32>
    %191 = math.tanh %190 : vector<8x128xf32>
    %cst_15 = arith.constant 5.000000e-01 : f32
    %192 = vector.broadcast %cst_15 : f32 to vector<8x128xf32>
    %193 = arith.mulf %192, %191 : vector<8x128xf32>
    %cst_16 = arith.constant 5.000000e-01 : f32
    %194 = vector.broadcast %cst_16 : f32 to vector<8x128xf32>
    %195 = arith.addf %193, %194 : vector<8x128xf32>
    %cst_17 = arith.constant 5.000000e-01 : f32
    %196 = vector.broadcast %cst_17 : f32 to vector<8x128xf32>
    %197 = arith.mulf %196, %171 : vector<8x128xf32>
    %198 = math.tanh %197 : vector<8x128xf32>
    %cst_18 = arith.constant 5.000000e-01 : f32
    %199 = vector.broadcast %cst_18 : f32 to vector<8x128xf32>
    %200 = arith.mulf %199, %198 : vector<8x128xf32>
    %cst_19 = arith.constant 5.000000e-01 : f32
    %201 = vector.broadcast %cst_19 : f32 to vector<8x128xf32>
    %202 = arith.addf %200, %201 : vector<8x128xf32>
    %cst_20 = arith.constant 5.000000e-01 : f32
    %203 = vector.broadcast %cst_20 : f32 to vector<8x128xf32>
    %204 = arith.mulf %203, %181 : vector<8x128xf32>
    %205 = math.tanh %204 : vector<8x128xf32>
    %cst_21 = arith.constant 5.000000e-01 : f32
    %206 = vector.broadcast %cst_21 : f32 to vector<8x128xf32>
    %207 = arith.mulf %206, %205 : vector<8x128xf32>
    %cst_22 = arith.constant 5.000000e-01 : f32
    %208 = vector.broadcast %cst_22 : f32 to vector<8x128xf32>
    %209 = arith.addf %207, %208 : vector<8x128xf32>
    %c0_23 = arith.constant 0 : index
    %c0_24 = arith.constant 0 : index
    %c0_25 = arith.constant 0 : index
    %210 = vector.load %arg3[%c0_23, %c0_24, %c0_25] : memref<6x8x128xf32, #tpu.memory_space<vmem>>, vector<1x8x128xf32>
    %211 = vector.shape_cast %210 : vector<1x8x128xf32> to vector<8x128xf32>
    %212 = vector.shape_cast %107 : vector<8x128xf32> to vector<1x8x128xf32>
    tpu.vector_store %arg3[%c0_23, %c0_24, %c0_25], %212 {strides = array<i32>} : memref<6x8x128xf32, #tpu.memory_space<vmem>>, vector<1x8x128xf32>,
    %c1_26 = arith.constant 1 : index
    %c0_27 = arith.constant 0 : index
    %c0_28 = arith.constant 0 : index
    %213 = vector.load %arg3[%c1_26, %c0_27, %c0_28] : memref<6x8x128xf32, #tpu.memory_space<vmem>>, vector<1x8x128xf32>
    %214 = vector.shape_cast %213 : vector<1x8x128xf32> to vector<8x128xf32>
    %215 = vector.shape_cast %117 : vector<8x128xf32> to vector<1x8x128xf32>
    tpu.vector_store %arg3[%c1_26, %c0_27, %c0_28], %215 {strides = array<i32>} : memref<6x8x128xf32, #tpu.memory_space<vmem>>, vector<1x8x128xf32>,
    %c2_29 = arith.constant 2 : index
    %c0_30 = arith.constant 0 : index
    %c0_31 = arith.constant 0 : index
    %216 = vector.load %arg3[%c2_29, %c0_30, %c0_31] : memref<6x8x128xf32, #tpu.memory_space<vmem>>, vector<1x8x128xf32>
    %217 = vector.shape_cast %216 : vector<1x8x128xf32> to vector<8x128xf32>
    %218 = vector.shape_cast %188 : vector<8x128xf32> to vector<1x8x128xf32>
    tpu.vector_store %arg3[%c2_29, %c0_30, %c0_31], %218 {strides = array<i32>} : memref<6x8x128xf32, #tpu.memory_space<vmem>>, vector<1x8x128xf32>,
    %c3_32 = arith.constant 3 : index
    %c0_33 = arith.constant 0 : index
    %c0_34 = arith.constant 0 : index
    %219 = vector.load %arg3[%c3_32, %c0_33, %c0_34] : memref<6x8x128xf32, #tpu.memory_space<vmem>>, vector<1x8x128xf32>
    %220 = vector.shape_cast %219 : vector<1x8x128xf32> to vector<8x128xf32>
    %221 = vector.shape_cast %195 : vector<8x128xf32> to vector<1x8x128xf32>
    tpu.vector_store %arg3[%c3_32, %c0_33, %c0_34], %221 {strides = array<i32>} : memref<6x8x128xf32, #tpu.memory_space<vmem>>, vector<1x8x128xf32>,
    %c4_35 = arith.constant 4 : index
    %c0_36 = arith.constant 0 : index
    %c0_37 = arith.constant 0 : index
    %222 = vector.load %arg3[%c4_35, %c0_36, %c0_37] : memref<6x8x128xf32, #tpu.memory_space<vmem>>, vector<1x8x128xf32>
    %223 = vector.shape_cast %222 : vector<1x8x128xf32> to vector<8x128xf32>
    %224 = vector.shape_cast %202 : vector<8x128xf32> to vector<1x8x128xf32>
    tpu.vector_store %arg3[%c4_35, %c0_36, %c0_37], %224 {strides = array<i32>} : memref<6x8x128xf32, #tpu.memory_space<vmem>>, vector<1x8x128xf32>,
    %c5_38 = arith.constant 5 : index
    %c0_39 = arith.constant 0 : index
    %c0_40 = arith.constant 0 : index
    %225 = vector.load %arg3[%c5_38, %c0_39, %c0_40] : memref<6x8x128xf32, #tpu.memory_space<vmem>>, vector<1x8x128xf32>
    %226 = vector.shape_cast %225 : vector<1x8x128xf32> to vector<8x128xf32>
    %227 = vector.shape_cast %209 : vector<8x128xf32> to vector<1x8x128xf32>
    tpu.vector_store %arg3[%c5_38, %c0_39, %c0_40], %227 {strides = array<i32>} : memref<6x8x128xf32, #tpu.memory_space<vmem>>, vector<1x8x128xf32>,
    return
  }
  func.func @transform_0(%arg0: i32) -> i32 {
    %c0_i32 = arith.constant 0 : i32
    %c0_i32_0 = arith.constant 0 : i32
    return %c0_i32 : i32
  }
  func.func @transform_1(%arg0: i32) -> (i32, i32, i32) {
    %c0_i32 = arith.constant 0 : i32
    %c0_i32_0 = arith.constant 0 : i32
    %c0_i32_1 = arith.constant 0 : i32
    return %c0_i32, %arg0, %c0_i32_0 : i32, i32, i32
  }
  func.func @transform_2(%arg0: i32) -> (i32, i32, i32) {
    %c0_i32 = arith.constant 0 : i32
    %c0_i32_0 = arith.constant 0 : i32
    %c0_i32_1 = arith.constant 0 : i32
    return %c0_i32, %arg0, %c0_i32_0 : i32, i32, i32
  }
}

</mosaic_0001>

<bundles_post_ra>
// kernel: tpu_custom_call.1
= control target key start
LH: loop header
LB: loop body
LE: loop exit
PB: predicated region body
PF: predicated region fallthrough
CT: control target
= control target key end

     0   :  { %7 = vsyncpa [#allocation5], 0  ;;  %s529_s0 = inlined_call_operand.hbm [shape: f32[48], index: 0, kind: input, shape index: {}]   ;;  %s530_s1 = inlined_call_operand.hbm [shape: f32[4,8,128], index: 1, kind: input, shape index: {}]   ;;  %s531_s2 = inlined_call_operand.hbm [shape: f32[6,8,128], index: 2, kind: output, shape index: {}]  }
   0x1   :  { %8 = vsyncpa [#allocation3], 0 }
   0x2   :  { %9 = vsyncpa [#allocation4], 0  ;;  %s15_s11 = sshll.u32 %s529_s0, 4  ;;  %s23_s14 = sshll.u32 %s530_s1, 4  ;;  %s16_s11 = int_to_ptr.hbm [resolvable:$true] %s15_s11  ;;  %s24_s14 = int_to_ptr.hbm [resolvable:$true] %s23_s14 }
   0x3   :  { %s407_s15 = smov [#allocation2]   ;;  %s408_s16 = smov [#allocation6]  }
   0x4   :  { %18 = dma.hbm_to_smem %s16_s11, 16, %s407_s15, [#allocation5]  }
   0x5   :  { %s25_s17 = sshll.u32 %s408_s16, 4  ;;  %s409_s18 = smov 128   ;;  %s26_s17 = int_to_ptr.vmem [resolvable:$true] %s25_s17 }
   0x6   :  { %s410_s19 = smov 8  }
   0x7   :  { %31 = dma.hbm_to_vmem [thread:$0]  %s24_s14, 512, %s26_s17, [#allocation3], %s409_s18, %s409_s18, %s410_s19  }
   0x8   :  { %401 = dma.done.wait [#allocation5], 16  }
   0x9   :  { %402 = vsyncadd [#allocation5], 4294967280 }
   0xa   :  { %403 = dma.done.wait [#allocation3], 512  }
   0xb   :  { %404 = vsyncadd [#allocation3], 4294966784 }
   0xc   :  { %40 = sfence }
   0xd   :  { %s41_s0 = sld [smem:[#allocation2]]  ;;  %v89_v0 = vld [vmem:[#allocation6] sm:$0xff]  ;;  %v91_v1 = vld [vmem:[#allocation6 + $0x8] sm:$0xff]  ;;  %v93_v2 = vld [vmem:[#allocation6 + $0x10] sm:$0xff] }
   0xe   :  { %s269_s20 = sld [smem:[#allocation2 + $0x1]]  ;;  %v95_v6 = vld [vmem:[#allocation6 + $0x18] sm:$0xff] }
   0xf   :  { %s270_s1 = sld [smem:[#allocation2 + $0x2]] }
  0x10   :  { %s271_s21 = sld [smem:[#allocation2 + $0x3]] }
  0x11   :  { %s272_s22 = sld [smem:[#allocation2 + $0x4]] }
  0x12   :  { %s273_s23 = sld [smem:[#allocation2 + $0x5]] }
  0x13   :  { %s274_s24 = sld [smem:[#allocation2 + $0x6]]  ;;  %v96_v3 = vstv %s41_s0 }
  0x14   :  { %s275_s25 = sld [smem:[#allocation2 + $0x7]]  ;;  %v97_v4 = vmul.f32 %v96_v3, %v89_v0  ;;  %v98_v5 = vstv %s269_s20 }
  0x15   :  { %s276_s26 = sld [smem:[#allocation2 + $0x8]]  ;;  %v99_v7 = vmul.f32 %v98_v5, %v91_v1  ;;  %v101_v8 = vstv %s270_s1 }
  0x16   :  { %s277_s27 = sld [smem:[#allocation2 + $0x9]]  ;;  %v102_v9 = vmul.f32 %v101_v8, %v93_v2  ;;  %v104_v10 = vstv %s271_s21 }
  0x17   :  { %s278_s28 = sld [smem:[#allocation2 + $0xa]]  ;;  %v100_v11 = vadd.f32 %v99_v7, %v97_v4  ;;  %v109_v12 = vstv %s272_s22  ;;  %v105_v13 = vmul.f32 %v104_v10, %v95_v6 }
  0x18   :  { %s279_s29 = sld [smem:[#allocation2 + $0xb]]  ;;  %v110_v14 = vmul.f32 %v109_v12, %v89_v0  ;;  %v111_v15 = vstv %s273_s23 }
  0x19   :  { %s280_s30 = sld [smem:[#allocation2 + $0xc]]  ;;  %v103_v16 = vadd.f32 %v102_v9, %v100_v11  ;;  %v112_v17 = vmul.f32 %v111_v15, %v91_v1  ;;  %v114_v18 = vstv %s274_s24 }
  0x1a   :  { %s281_s3 = sld [smem:[#allocation2 + $0xd]]  ;;  %v115_v19 = vmul.f32 %v114_v18, %v93_v2  ;;  %v117_v20 = vstv %s275_s25 }
  0x1b   :  { %s436_s4 = sld [smem:[#allocation2 + $0xe]]  ;;  %v113_v21 = vadd.f32 %v112_v17, %v110_v14  ;;  %v118_v22 = vmul.f32 %v117_v20, %v95_v6  ;;  %v122_v23 = vstv %s276_s26  ;;  %v106_v24 = vadd.f32 %v105_v13, %v103_v16 }
  0x1c   :  { %v123_v25 = vmul.f32 %v122_v23, %v89_v0  ;;  %v124_v26 = vstv %s277_s27  ;;  %s438_s5 = sld [smem:[#allocation2 + $0xf]] }
  0x1d   :  { %v116_v27 = vadd.f32 %v115_v19, %v113_v21  ;;  %v125_v28 = vmul.f32 %v124_v26, %v91_v1  ;;  %v127_v29 = vstv %s278_s28  ;;  %s440_s6 = sld [smem:[#allocation2 + $0x10]] }
  0x1e   :  { %v128_v30 = vmul.f32 %v127_v29, %v93_v2  ;;  %v130_v31 = vstv %s279_s29  ;;  %s442_s7 = sld [smem:[#allocation2 + $0x11]] }
  0x1f   :  { %v107_v32 = vstv %s280_s30  ;;  %v119_v33 = vadd.f32 %v118_v22, %v116_v27  ;;  %v126_v34 = vadd.f32 %v125_v28, %v123_v25  ;;  %v131_v35 = vmul.f32 %v130_v31, %v95_v6  ;;  %s444_s8 = sld [smem:[#allocation2 + $0x15]] }
  0x20   :  { %v108_v36 = vadd.f32 %v107_v32, %v106_v24  ;;  %v120_v37 = vstv %s281_s3  ;;  %s446_s9 = sld [smem:[#allocation2 + $0x17]] }
  0x21   :  { %v121_v38 = vadd.f32 %v120_v37, %v119_v33  ;;  %v129_v39 = vadd.f32 %v128_v30, %v126_v34  ;;  %s448_s10 = sld [smem:[#allocation2 + $0x19]]  ;;  %v133_v40 = vstv %s436_s4 }
  0x22   :  { %321 = vtanh.f32 %v108_v36  ;;  %s286_s11 = sld [smem:[#allocation2 + $0x12]]  ;;  %v138_v43 = vstv %s438_s5 }
  0x23   :  { %v132_v41 = vadd.f32 %v131_v35, %v129_v39  ;;  %323 = vtanh.f32 %v121_v38  ;;  %s287_s12 = sld [smem:[#allocation2 + $0x13]]  ;;  %v140_v44 = vstv %s440_s6 }
  0x24   :  { %s288_s13 = sld [smem:[#allocation2 + $0x14]]  ;;  %v143_v52 = vstv %s442_s7 }
  0x25   :  { %v134_v42 = vadd.f32 %v133_v40, %v132_v41  ;;  %s451_s14 = sld [smem:[#allocation2 + $0x1b]]  ;;  %v146_v60 = vstv %s444_s8 }
  0x26   :  { %s455_s15 = sld [smem:[#allocation2 + $0x16]]  ;;  %v158_v0 = vstv %s446_s9 }
  0x27   :  { %325 = vtanh.f32 %v134_v42  ;;  %s457_s16 = sld [smem:[#allocation2 + $0x18]]  ;;  %v165_v1 = vstv %s448_s10  ;;  %s411_s10 = smov [#allocation7]  }
  0x28   :  { %v322_v45 = vpop.eup %321  ;;  %s459_s17 = sld [smem:[#allocation2 + $0x1a]]  ;;  %v148_v48 = vstv %s286_s11  ;;  %s253_s11 = sshll.u32 %s411_s10, 4  ;;  %s254_s11 = int_to_ptr.vmem [resolvable:$true] %s253_s11 }
  0x29   :  { %v324_v46 = vpop.eup %323  ;;  %v139_v47 = vmul.f32 %v322_v45, %v138_v43  ;;  %s461_s0 = sld [smem:[#allocation2 + $0x1c]]  ;;  %v149_v50 = vmul.f32 %v322_v45, %v148_v48  ;;  %v150_v51 = vstv %s287_s12 }
  0x2a   :  { %v141_v49 = vmul.f32 %v324_v46, %v140_v44  ;;  %v151_v53 = vmul.f32 %v324_v46, %v150_v51  ;;  %v153_v54 = vstv %s288_s13  ;;  %s464_s20 = sld [smem:[#allocation2 + $0x1d]] }
  0x2b   :  { %s466_s1 = sld [smem:[#allocation2 + $0x1e]]  ;;  %v172_v2 = vstv %s451_s14  ;;  %s255_s14 = sshll.u32 %s531_s2, 4  ;;  %s256_s14 = int_to_ptr.hbm [resolvable:$true] %s255_s14 }
  0x2c   :  { %v142_v55 = vadd.f32 %v141_v49, %v139_v47  ;;  %v152_v57 = vadd.f32 %v151_v53, %v149_v50  ;;  %s468_s21 = sld [smem:[#allocation2 + $0x1f]]  ;;  %v156_v61 = vstv %s455_s15 }
  0x2d   :  { %v326_v56 = vpop.eup %325  ;;  %s472_s22 = sld [smem:[#allocation2 + $0x20]]  ;;  %v160_v3 = vstv %s457_s16 }
  0x2e   :  { %v144_v58 = vmul.f32 %v326_v56, %v143_v52  ;;  %v154_v59 = vmul.f32 %v326_v56, %v153_v54  ;;  %s474_s23 = sld [smem:[#allocation2 + $0x21]]  ;;  %v167_v6 = vstv %s459_s17 }
  0x2f   :  { %s480_s24 = sld [smem:[#allocation2 + $0x22]]  ;;  %v174_v7 = vstv %s461_s0 }
  0x30   :  { %v145_v62 = vadd.f32 %v144_v58, %v142_v55  ;;  %v155_v63 = vadd.f32 %v154_v59, %v152_v57  ;;  %s484_s25 = sld [smem:[#allocation2 + $0x2c]]  ;;  %v163_v12 = vstv %s464_s20 }
  0x31   :  { %s486_s26 = sld [smem:[#allocation2 + $0x23]]  ;;  %v170_v16 = vstv %s466_s1 }
  0x32   :  { %v147_v4 = vadd.f32 %v146_v60, %v145_v62  ;;  %v157_v5 = vadd.f32 %v156_v61, %v155_v63  ;;  %s488_s27 = sld [smem:[#allocation2 + $0x24]]  ;;  %v177_v17 = vstv %s468_s21 }
  0x33   :  { %s491_s28 = sld [smem:[#allocation2 + $0x25]]  ;;  %v182_v23 = vstv %s472_s22 }
  0x34   :  { %v159_v8 = vmul.f32 %v158_v0, %v147_v4  ;;  %v166_v9 = vmul.f32 %v165_v1, %v147_v4  ;;  %v173_v10 = vmul.f32 %v172_v2, %v147_v4  ;;  %238 = vst [vmem:[#allocation7] sm:$0xff] %v147_v4  ;;  %v161_v11 = vmul.f32 %v160_v3, %v157_v5  ;;  %s495_s29 = sld [smem:[#allocation2 + $0x26]] }
  0x35   :  { %v168_v13 = vmul.f32 %v167_v6, %v157_v5  ;;  %v175_v14 = vmul.f32 %v174_v7, %v157_v5  ;;  %240 = vst [vmem:[#allocation7 + $0x8] sm:$0xff] %v157_v5  ;;  %s497_s30 = sld [smem:[#allocation2 + $0x27]]  ;;  %v184_v26 = vstv %s474_s23  ;;  %v187_v31 = vstv %s480_s24 }
  0x36   :  { %v162_v15 = vadd.f32 %v161_v11, %v159_v8  ;;  %s499_s3 = sld [smem:[#allocation2 + $0x28]]  ;;  %v190_v53 = vstv %s484_s25 }
  0x37   :  { %v169_v18 = vadd.f32 %v168_v13, %v166_v9  ;;  %v176_v19 = vadd.f32 %v175_v14, %v173_v10  ;;  %s309_s4 = sld [smem:[#allocation2 + $0x29]]  ;;  %v192_v24 = vstv %s486_s26 }
  0x38   :  { %v164_v20 = vadd.f32 %v163_v12, %v162_v15  ;;  %s310_s5 = sld [smem:[#allocation2 + $0x2a]]  ;;  %v194_v27 = vstv %s488_s27 }
  0x39   :  { %v171_v21 = vadd.f32 %v170_v16, %v169_v18  ;;  %v178_v22 = vadd.f32 %v177_v17, %v176_v19  ;;  %s501_s6 = sld [smem:[#allocation2 + $0x2b]]  ;;  %v197_v32 = vstv %s491_s28 }
  0x3a   :  { %327 = vtanh.f32 %v164_v20  ;;  %s503_s7 = sld [smem:[#allocation2 + $0x2d]]  ;;  %v202_v25 = vstv %s495_s29 }
  0x3b   :  { %329 = vtanh.f32 %v171_v21  ;;  %s505_s8 = sld [smem:[#allocation2 + $0x2e]]  ;;  %v204_v28 = vstv %s497_s30 }
  0x3c   :  { %331 = vtanh.f32 %v178_v22  ;;  %s510_s9 = sld [smem:[#allocation2 + $0x2f]]  ;;  %v207_v33 = vstv %s499_s3 }
  0x3d   :  { %v212_v29 = vstv %s309_s4 }
  0x3e   :  { %v214_v34 = vstv %s310_s5 }
  0x3f   :  { %v217_v48 = vstv %s501_s6 }
  0x40   :  { %v328_v30 = vpop.eup %327  ;;  %v200_v54 = vstv %s503_s7 }
  0x41   :  { %v330_v35 = vpop.eup %329  ;;  %v183_v36 = vmul.f32 %v328_v30, %v182_v23  ;;  %v193_v37 = vmul.f32 %v328_v30, %v192_v24  ;;  %v203_v38 = vmul.f32 %v328_v30, %v202_v25  ;;  %v213_v39 = vmul.f32 %v328_v30, %v212_v29 }
  0x42   :  { %v332_v40 = vpop.eup %331  ;;  %v185_v41 = vmul.f32 %v330_v35, %v184_v26  ;;  %v195_v42 = vmul.f32 %v330_v35, %v194_v27  ;;  %v205_v43 = vmul.f32 %v330_v35, %v204_v28  ;;  %v215_v44 = vmul.f32 %v330_v35, %v214_v34 }
  0x43   :  { %v188_v45 = vmul.f32 %v332_v40, %v187_v31  ;;  %v198_v46 = vmul.f32 %v332_v40, %v197_v32  ;;  %v208_v47 = vmul.f32 %v332_v40, %v207_v33  ;;  %v210_v55 = vstv %s505_s8 }
  0x44   :  { %v186_v49 = vadd.f32 %v185_v41, %v183_v36  ;;  %v196_v50 = vadd.f32 %v195_v42, %v193_v37  ;;  %v206_v51 = vadd.f32 %v205_v43, %v203_v38  ;;  %v216_v52 = vadd.f32 %v215_v44, %v213_v39 }
  0x45   :  { %v218_v56 = vmul.f32 %v332_v40, %v217_v48  ;;  %v220_v60 = vstv %s510_s9 }
  0x46   :  { %v189_v57 = vadd.f32 %v188_v45, %v186_v49  ;;  %v199_v58 = vadd.f32 %v198_v46, %v196_v50  ;;  %v209_v59 = vadd.f32 %v208_v47, %v206_v51 }
  0x47   :  { %v219_v61 = vadd.f32 %v218_v56, %v216_v52 }
  0x48   :  { %v191_v62 = vadd.f32 %v190_v53, %v189_v57  ;;  %v201_v63 = vadd.f32 %v200_v54, %v199_v58  ;;  %v211_v0 = vadd.f32 %v210_v55, %v209_v59 }
  0x49   :  { %v221_v1 = vadd.f32 %v220_v60, %v219_v61 }
  0x4a   :  { %v222_v2 = vmul.f32 0.5, %v191_v62  ;;  %v226_v3 = vmul.f32 0.5, %v201_v63  ;;  %v230_v4 = vmul.f32 0.5, %v211_v0 }
  0x4b   :  { %v234_v5 = vmul.f32 0.5, %v221_v1 }
  0x4c   :  { %333 = vtanh.f32 %v222_v2 }
  0x4d   :  { %335 = vtanh.f32 %v226_v3 }
  0x4e   :  { %337 = vtanh.f32 %v230_v4 }
  0x4f   :  { %339 = vtanh.f32 %v234_v5 }
  0x52   :  { %v334_v6 = vpop.eup %333 }
  0x53   :  { %v336_v7 = vpop.eup %335  ;;  %v224_v8 = vmul.f32 0.5, %v334_v6 }
  0x54   :  { %v338_v9 = vpop.eup %337  ;;  %v228_v10 = vmul.f32 0.5, %v336_v7 }
  0x55   :  { %v340_v11 = vpop.eup %339  ;;  %v225_v12 = vadd.f32 0.5, %v224_v8  ;;  %v232_v13 = vmul.f32 0.5, %v338_v9 }
  0x56   :  { %v229_v14 = vadd.f32 0.5, %v228_v10  ;;  %v236_v15 = vmul.f32 0.5, %v340_v11 }
  0x57   :  { %242 = vst [vmem:[#allocation7 + $0x10] sm:$0xff] %v225_v12  ;;  %v233_v16 = vadd.f32 0.5, %v232_v13 }
  0x58   :  { %244 = vst [vmem:[#allocation7 + $0x18] sm:$0xff] %v229_v14  ;;  %v237_v17 = vadd.f32 0.5, %v236_v15 }
  0x59   :  { %246 = vst [vmem:[#allocation7 + $0x20] sm:$0xff] %v233_v16 }
  0x5a   :  { %248 = vst [vmem:[#allocation7 + $0x28] sm:$0xff] %v237_v17 }
  0x5b   :  { %261 = dma.vmem_to_hbm [thread:$0]  %s254_s11, 768, %s256_s14, [#allocation4], %s409_s18, %s409_s18, %s410_s19  }
  0x5c   :  { %405 = dma.done.wait [#allocation4], 768  }
  0x5d   :  { %406 = vsyncadd [#allocation4], 4294966528 }
  0x5e   :  { %266 = vsyncpa [#allocation3], 1 }
  0x5f   :  { %267 = vsyncpa [#allocation4], 1 }
  0x60   :  { %268 = vsyncpa [#allocation5], 1 }

</bundles_post_ra>
